<compile_context>
chip_gen: v7x
topology: tpu7x:2x2x1
jax: 0.10.0
libtpu: 0.0.40
codegen_flags: <defaults>
</compile_context>

<pallas_src>
import numpy as np
import jax
import jax.numpy as jnp
from jax import lax
from jax.experimental import pallas as pl
from jax.experimental.pallas import tpu as pltpu

ENC_DIM, ND, OUT_DIM = 16, 128, 64          # encoded_dim, num_dense_feat, 8*8
PACK = 2                                    # batch rows packed per feature row
ENC_P, ND_P, OUT_P = ENC_DIM * PACK, ND * PACK, OUT_DIM * PACK   # 32, 256, 128


# ----------------------------- Pallas kernel ------------------------------ #
def decoder_kernel(x_ref, w1_ref, b1_ref, w2_ref, b2_ref, mc_ref, bc_ref, o_ref):
    x = x_ref[...]                                                     # (TB, 32)
    h1 = jnp.dot(x, w1_ref[...], preferred_element_type=jnp.float32) + b1_ref[...]
    h1 = jnp.maximum(h1, 0.0)                                          # (TB, 256)
    h2 = jnp.dot(h1, w2_ref[...], preferred_element_type=jnp.float32) + b2_ref[...]
    h2 = jnp.maximum(h2, 0.0)                                          # (TB, 128)
    # Packed (block-diagonal) ConvTranspose2d-as-matmul: (TB,128)@(128,128).
    y = jnp.dot(h2, mc_ref[...], preferred_element_type=jnp.float32) + bc_ref[...]
    # sigmoid(y) == 0.5 * tanh(0.5 * y) + 0.5  -> single EUP op, exact.
    out = 0.5 * jnp.tanh(0.5 * y) + 0.5
    o_ref[...] = out.astype(o_ref.dtype)


def _round_up(n, m):
    return ((n + m - 1) // m) * m


def decoder_forward(x, packed_params, *, batch_tile=4096, out_dtype=jnp.float32):
    """x: (B, 16) float32 -> (B, 1, 8, 8) out_dtype."""
    w1p, b1p, w2p, b2p, mcp, bcp = packed_params
    B = x.shape[0]
    assert x.shape[1] == ENC_DIM

    # --- pack 2 batch rows per feature row (free, row-major reshape) ---
    B_pad = _round_up(B, PACK)
    if B_pad != B:
        x = jnp.concatenate([x, jnp.zeros((B_pad - B, ENC_DIM), x.dtype)], 0)
    xp = x.reshape(B_pad // PACK, ENC_P)                               # (bp, 32)
    bp = B_pad // PACK

    # --- batch tile (packed rows): multiple of 16 (safe for f32 and bf16
    # output tiles), >= 2 grid steps when possible (v7x megacore), capped so
    # VMEM stays ~16 MiB at tile=4096 (fits v7x's 64 MiB physical easily). ---
    if bp <= 16:
        tb = bp                       # single step; block == full array extent
    else:
        tb = min(batch_tile, _round_up(pl.cdiv(bp, 2), 16))
    grid = (pl.cdiv(bp, tb),)

    # Batch-tiled input/output; weights/biases are full blocks at a constant
    # block index so they stay resident in VMEM across the whole grid.
    in_specs = [
        pl.BlockSpec((tb, ENC_P),     lambda i: (i, 0)),    # packed x
        pl.BlockSpec((ENC_P, ND_P),   lambda i: (0, 0)),    # W1 (block-diag)
        pl.BlockSpec((1, ND_P),       lambda i: (0, 0)),    # b1
        pl.BlockSpec((ND_P, OUT_P),   lambda i: (0, 0)),    # W2 (block-diag)
        pl.BlockSpec((1, OUT_P),      lambda i: (0, 0)),    # b2
        pl.BlockSpec((OUT_P, OUT_P),  lambda i: (0, 0)),    # conv matrix
        pl.BlockSpec((1, OUT_P),      lambda i: (0, 0)),    # conv bias
    ]
    out_specs = pl.BlockSpec((tb, OUT_P), lambda i: (i, 0))

    out_itemsize = jnp.dtype(out_dtype).itemsize
    weight_bytes = 4 * (ENC_P * ND_P + ND_P + ND_P * OUT_P + OUT_P
                        + OUT_P * OUT_P + OUT_P)
    cost = pl.CostEstimate(
        flops=2 * bp * (ENC_P * ND_P + ND_P * OUT_P + OUT_P * OUT_P),
        transcendentals=bp * OUT_P,
        bytes_accessed=bp * ENC_P * 4 + bp * OUT_P * out_itemsize + weight_bytes,
    )

    out_flat = pl.pallas_call(
        decoder_kernel,
        out_shape=jax.ShapeDtypeStruct((bp, OUT_P), out_dtype),
        grid=grid,
        in_specs=in_specs,
        out_specs=out_specs,
        compiler_params=pltpu.CompilerParams(
            dimension_semantics=("parallel",),     # megacore split on v7x
            vmem_limit_bytes=48 * 1024 * 1024,     # headroom (v5e default is 16 MiB)
        ),
        cost_estimate=cost,
    )(xp, w1p, b1p, w2p, b2p, mcp, bcp)

    # Unpack: (bp, 128) -> (B_pad, 64) -> drop padding -> NCHW (layout glue).
    return out_flat.reshape(B_pad, OUT_DIM)[:B].reshape(B, 1, 8, 8)


# --------------------------- parameter building ---------------------------- #
def _uniform(key, shape, bound):
    return jax.random.uniform(key, shape, jnp.float32, -bound, bound)


def _block_diag2(a):
    n, m = a.shape
    out = jnp.zeros((2 * n, 2 * m), a.dtype)
    return out.at[:n, :m].set(a).at[n:, m:].set(a)


def _tile2(b):
    return jnp.concatenate([b, b], axis=-1)


def init_params(seed=0):
    """Deterministic PyTorch-style (uniform +/- 1/sqrt(fan_in)) init.

    Returns (base_params, packed_params, conv_weight_3x3, conv_bias)."""
    keys = jax.random.split(jax.random.PRNGKey(seed), 6)

    # Linear(16, 128): stored as (in, out) so the kernel does x @ W.
    w1 = _uniform(keys[0], (ENC_DIM, ND), 1.0 / np.sqrt(ENC_DIM))
    b1 = _uniform(keys[1], (1, ND), 1.0 / np.sqrt(ENC_DIM))
    # Linear(128, 64)
    w2 = _uniform(keys[2], (ND, OUT_DIM), 1.0 / np.sqrt(ND))
    b2 = _uniform(keys[3], (1, OUT_DIM), 1.0 / np.sqrt(ND))
    # ConvTranspose2d(1, 1, 3, stride=1, padding=1): weight (1, 1, 3, 3)
    fan = 1 * 3 * 3
    wct = _uniform(keys[4], (3, 3), 1.0 / np.sqrt(fan))
    bct = _uniform(keys[5], (), 1.0 / np.sqrt(fan))

    # Build 64x64 M s.t. flat_out = flat_in @ M reproduces ConvTranspose2d
    # (stride=1, pad=1) on an 8x8 single-channel image:
    #   out[i, j] += in[p, q] * w[ky, kx],  i = p - 1 + ky, j = q - 1 + kx
    w_np = np.asarray(wct)
    M = np.zeros((OUT_DIM, OUT_DIM), np.float32)
    for p in range(8):
        for q in range(8):
            for ky in range(3):
                for kx in range(3):
                    i, j = p - 1 + ky, q - 1 + kx
                    if 0 <= i < 8 and 0 <= j < 8:
                        M[p * 8 + q, i * 8 + j] += w_np[ky, kx]
    mconv = jnp.asarray(M)
    bconv = jnp.full((1, OUT_DIM), float(np.asarray(bct)), jnp.float32)

    base = (w1, b1, w2, b2, mconv, bconv)
    # Pack-factor-2 block-diagonal weights: one 128-lane-dense kernel pass
    # processes two samples at once (structural-zero MACs are free, MXU idle).
    packed = (_block_diag2(w1), _tile2(b1),
              _block_diag2(w2), _tile2(b2),
              _block_diag2(mconv), _tile2(bconv))
    return base, packed, wct, bct


# ------------------------------ JAX reference ------------------------------ #
def reference_forward(x, base_params, wct, bct):
    w1, b1, w2, b2, _, _ = base_params
    h1 = jnp.maximum(x @ w1 + b1, 0.0)
    h2 = jnp.maximum(h1 @ w2 + b2, 0.0)
    img = h2.reshape(-1, 1, 8, 8)
    # ConvTranspose2d(s=1, p=1) == correlation with spatially flipped kernel, pad 1.
    k = wct[::-1, ::-1][None, None, :, :]  # OIHW
    y = lax.conv_general_dilated(
        img, k, window_strides=(1, 1), padding=((1, 1), (1, 1)),
        dimension_numbers=("NCHW", "OIHW", "NCHW"),
    ) + bct
    return jax.nn.sigmoid(y)


# ---------------------------------- main ----------------------------------- #
if __name__ == "__main__":
    base_params, packed_params, wct, bct = init_params(seed=0)
    root = jax.random.PRNGKey(0)

    # Default f32 output path, exact numerics (tanh-form sigmoid).
    # B=2: tiny batch; B=11: odd batch (exercises pack padding);
    # B=40: >1 grid step + ragged last tile (exercises masked writeback).
    for B in (2, 11, 40):
        key = jax.random.fold_in(root, B)
        x = jax.random.normal(key, (B, ENC_DIM), jnp.float32)
        ref = reference_forward(x, base_params, wct, bct)
        out = jax.block_until_ready(decoder_forward(x, packed_params))
        assert out.shape == (B, 1, 8, 8), out.shape
        np.testing.assert_allclose(np.asarray(out), np.asarray(ref),
                                   rtol=1e-5, atol=1e-5)

    # Optional bf16-output path (halves writeback bytes): relaxed tolerance.
    B = 2
    x = jax.random.normal(root, (B, ENC_DIM), jnp.float32)
    ref = reference_forward(x, base_params, wct, bct)
    out_bf16 = jax.block_until_ready(
        decoder_forward(x, packed_params, out_dtype=jnp.bfloat16))
    np.testing.assert_allclose(np.asarray(out_bf16.astype(jnp.float32)),
                               np.asarray(ref), rtol=2e-2, atol=1e-2)

    print("KERNEL_OK")
</pallas_src>

<mosaic_0001>
module attributes {stable_mosaic.version = 11 : i64} {
  func.func @decoder_kernel(%arg0: i32, %arg1: memref<1x32xf32, #tpu.memory_space<vmem>>, %arg2: memref<32x256xf32, #tpu.memory_space<vmem>>, %arg3: memref<1x256xf32, #tpu.memory_space<vmem>>, %arg4: memref<256x128xf32, #tpu.memory_space<vmem>>, %arg5: memref<1x128xf32, #tpu.memory_space<vmem>>, %arg6: memref<128x128xf32, #tpu.memory_space<vmem>>, %arg7: memref<1x128xf32, #tpu.memory_space<vmem>>, %arg8: memref<1x128xf32, #tpu.memory_space<vmem>>) attributes {dimension_semantics = [#tpu.dimension_semantics<parallel>], iteration_bounds = array<i64: 1>, scalar_prefetch = 0 : i64, scratch_operands = 0 : i64, tpu.core_type = #tpu.core_type<tc>, window_params = [{transform_indices = @transform_0, window_bounds = array<i64: 1, 32>}, {pipeline_mode = #tpu.pipeline_mode<synchronous>, transform_indices = @transform_1, window_bounds = array<i64: 32, 256>}, {pipeline_mode = #tpu.pipeline_mode<synchronous>, transform_indices = @transform_2, window_bounds = array<i64: 1, 256>}, {pipeline_mode = #tpu.pipeline_mode<synchronous>, transform_indices = @transform_3, window_bounds = array<i64: 256, 128>}, {pipeline_mode = #tpu.pipeline_mode<synchronous>, transform_indices = @transform_4, window_bounds = array<i64: 1, 128>}, {pipeline_mode = #tpu.pipeline_mode<synchronous>, transform_indices = @transform_5, window_bounds = array<i64: 128, 128>}, {pipeline_mode = #tpu.pipeline_mode<synchronous>, transform_indices = @transform_6, window_bounds = array<i64: 1, 128>}, {transform_indices = @transform_7, window_bounds = array<i64: 1, 128>}]} {
    %c0 = arith.constant 0 : index
    %c0_0 = arith.constant 0 : index
    %0 = vector.load %arg1[%c0, %c0_0] : memref<1x32xf32, #tpu.memory_space<vmem>>, vector<1x32xf32>
    %c0_1 = arith.constant 0 : index
    %c0_2 = arith.constant 0 : index
    %1 = vector.load %arg2[%c0_1, %c0_2] : memref<32x256xf32, #tpu.memory_space<vmem>>, vector<32x256xf32>
    %cst = arith.constant dense<0.000000e+00> : vector<1x256xf32>
    %2 = tpu.matmul %0, %1, %cst {dimension_numbers = #tpu.dot_dimension_numbers<[1], [0], [0], [1], [0, 0, 1, 1], [], []>} : vector<1x32xf32>, vector<32x256xf32>, vector<1x256xf32> -> vector<1x256xf32>
    %c0_3 = arith.constant 0 : index
    %c0_4 = arith.constant 0 : index
    %3 = vector.load %arg3[%c0_3, %c0_4] : memref<1x256xf32, #tpu.memory_space<vmem>>, vector<1x256xf32>
    %4 = arith.addf %2, %3 : vector<1x256xf32>
    %cst_5 = arith.constant 0.000000e+00 : f32
    %5 = vector.broadcast %cst_5 : f32 to vector<1x256xf32>
    %6 = arith.maximumf %4, %5 : vector<1x256xf32>
    %c0_6 = arith.constant 0 : index
    %c0_7 = arith.constant 0 : index
    %7 = vector.load %arg4[%c0_6, %c0_7] : memref<256x128xf32, #tpu.memory_space<vmem>>, vector<256x128xf32>
    %cst_8 = arith.constant dense<0.000000e+00> : vector<1x128xf32>
    %8 = tpu.matmul %6, %7, %cst_8 {dimension_numbers = #tpu.dot_dimension_numbers<[1], [0], [0], [1], [0, 0, 1, 1], [], []>} : vector<1x256xf32>, vector<256x128xf32>, vector<1x128xf32> -> vector<1x128xf32>
    %c0_9 = arith.constant 0 : index
    %c0_10 = arith.constant 0 : index
    %9 = vector.load %arg5[%c0_9, %c0_10] : memref<1x128xf32, #tpu.memory_space<vmem>>, vector<1x128xf32>
    %10 = arith.addf %8, %9 : vector<1x128xf32>
    %cst_11 = arith.constant 0.000000e+00 : f32
    %11 = vector.broadcast %cst_11 : f32 to vector<1x128xf32>
    %12 = arith.maximumf %10, %11 : vector<1x128xf32>
    %c0_12 = arith.constant 0 : index
    %c0_13 = arith.constant 0 : index
    %13 = vector.load %arg6[%c0_12, %c0_13] : memref<128x128xf32, #tpu.memory_space<vmem>>, vector<128x128xf32>
    %cst_14 = arith.constant dense<0.000000e+00> : vector<1x128xf32>
    %14 = tpu.matmul %12, %13, %cst_14 {dimension_numbers = #tpu.dot_dimension_numbers<[1], [0], [0], [1], [0, 0, 1, 1], [], []>} : vector<1x128xf32>, vector<128x128xf32>, vector<1x128xf32> -> vector<1x128xf32>
    %c0_15 = arith.constant 0 : index
    %c0_16 = arith.constant 0 : index
    %15 = vector.load %arg7[%c0_15, %c0_16] : memref<1x128xf32, #tpu.memory_space<vmem>>, vector<1x128xf32>
    %16 = arith.addf %14, %15 : vector<1x128xf32>
    %cst_17 = arith.constant 5.000000e-01 : f32
    %17 = vector.broadcast %cst_17 : f32 to vector<1x128xf32>
    %18 = arith.mulf %17, %16 : vector<1x128xf32>
    %19 = math.tanh %18 : vector<1x128xf32>
    %cst_18 = arith.constant 5.000000e-01 : f32
    %20 = vector.broadcast %cst_18 : f32 to vector<1x128xf32>
    %21 = arith.mulf %20, %19 : vector<1x128xf32>
    %cst_19 = arith.constant 5.000000e-01 : f32
    %22 = vector.broadcast %cst_19 : f32 to vector<1x128xf32>
    %23 = arith.addf %21, %22 : vector<1x128xf32>
    %c0_20 = arith.constant 0 : index
    %c0_21 = arith.constant 0 : index
    %24 = vector.load %arg8[%c0_20, %c0_21] : memref<1x128xf32, #tpu.memory_space<vmem>>, vector<1x128xf32>
    tpu.vector_store %arg8[%c0_20, %c0_21], %23 {strides = array<i32>} : memref<1x128xf32, #tpu.memory_space<vmem>>, vector<1x128xf32>,
    return
  }
  func.func @transform_0(%arg0: i32) -> (i32, i32) {
    %c0_i32 = arith.constant 0 : i32
    %c0_i32_0 = arith.constant 0 : i32
    return %arg0, %c0_i32 : i32, i32
  }
  func.func @transform_1(%arg0: i32) -> (i32, i32) {
    %c0_i32 = arith.constant 0 : i32
    %c0_i32_0 = arith.constant 0 : i32
    %c0_i32_1 = arith.constant 0 : i32
    return %c0_i32, %c0_i32_0 : i32, i32
  }
  func.func @transform_2(%arg0: i32) -> (i32, i32) {
    %c0_i32 = arith.constant 0 : i32
    %c0_i32_0 = arith.constant 0 : i32
    %c0_i32_1 = arith.constant 0 : i32
    return %c0_i32, %c0_i32_0 : i32, i32
  }
  func.func @transform_3(%arg0: i32) -> (i32, i32) {
    %c0_i32 = arith.constant 0 : i32
    %c0_i32_0 = arith.constant 0 : i32
    %c0_i32_1 = arith.constant 0 : i32
    return %c0_i32, %c0_i32_0 : i32, i32
  }
  func.func @transform_4(%arg0: i32) -> (i32, i32) {
    %c0_i32 = arith.constant 0 : i32
    %c0_i32_0 = arith.constant 0 : i32
    %c0_i32_1 = arith.constant 0 : i32
    return %c0_i32, %c0_i32_0 : i32, i32
  }
  func.func @transform_5(%arg0: i32) -> (i32, i32) {
    %c0_i32 = arith.constant 0 : i32
    %c0_i32_0 = arith.constant 0 : i32
    %c0_i32_1 = arith.constant 0 : i32
    return %c0_i32, %c0_i32_0 : i32, i32
  }
  func.func @transform_6(%arg0: i32) -> (i32, i32) {
    %c0_i32 = arith.constant 0 : i32
    %c0_i32_0 = arith.constant 0 : i32
    %c0_i32_1 = arith.constant 0 : i32
    return %c0_i32, %c0_i32_0 : i32, i32
  }
  func.func @transform_7(%arg0: i32) -> (i32, i32) {
    %c0_i32 = arith.constant 0 : i32
    %c0_i32_0 = arith.constant 0 : i32
    return %arg0, %c0_i32 : i32, i32
  }
}

</mosaic_0001>

<bundles_post_ra>
// kernel: tpu_custom_call.1
= control target key start
LH: loop header
LB: loop body
LE: loop exit
PB: predicated region body
PF: predicated region fallthrough
CT: control target
= control target key end

     0   :  { %12 = vsyncpa [#allocation3], 0  ;;  %s798_s0 = inlined_call_operand.hbm [shape: f32[1,32], index: 0, kind: input, shape index: {}]   ;;  %s799_s1 = inlined_call_operand.hbm [shape: f32[32,256], index: 1, kind: input, shape index: {}]   ;;  %s800_s2 = inlined_call_operand.vmem [shape: f32[1,256], index: 2, kind: input, shape index: {}]   ;;  %s801_s3 = inlined_call_operand.hbm [shape: f32[256,128], index: 3, kind: input, shape index: {}]   ;;  %s802_s4 = inlined_call_operand.vmem [shape: f32[1,128], index: 4, kind: input, shape index: {}]   ;;  %s803_s5 = inlined_call_operand.hbm [shape: f32[128,128], index: 5, kind: input, shape index: {}]   ;;  %s804_s6 = inlined_call_operand.vmem [shape: f32[1,128], index: 6, kind: input, shape index: {}]   ;;  %s805_s7 = inlined_call_operand.hbm [shape: f32[1,128], index: 7, kind: output, shape index: {}]  }
   0x1   :  { %13 = vsyncpa [#allocation6], 0 }
   0x2   :  { %14 = vsyncpa [#allocation9], 0 }
   0x3   :  { %15 = vsyncpa [#allocation4], 0  ;;  %s675_s24 = smov [#allocation5]   ;;  %s557_s28 = scalar_lea.hbm %s799_s1, 1024 }
   0x4   :  { %s31_s25 = sshll.u32 %s675_s24, 4  ;;  %p558_p0 = scmp.ne.s32.totalorder %s799_s1, %s557_s28  ;;  %s32_s25 = int_to_ptr.vmem [resolvable:$true] %s31_s25 }
   0x5   :  { %p561_p1 = scmp.lt.u32.totalorder %s557_s28, %s799_s1 }
   0x7   :  { %p563_p2 = pnand %p561_p1, %p558_p0 }
   0x9   :  { %566 = shalt.err (!%p563_p2)
}
   0xa   :  { %s567_s10 = scalar_lea.vmem %s32_s25, 1024  ;;  %p572_p4 = scmp.lt.s32.totalorder %s32_s25, %s32_s25 }
   0xb   :  { %p568_p3 = scmp.ne.s32.totalorder %s32_s25, %s567_s10  ;;  %p573_p5 = scmp.lt.s32.totalorder %s567_s10, %s567_s10 }
   0xd   :  { %p574_p6 = por %p573_p5, %p572_p4 }
   0xf   :  { %p575_p7 = pnand %p574_p6, %p568_p3 }
  0x11   :  { %578 = shalt.err (!%p575_p7)
}
  0x12   :  { %s676_s11 = smov 256   ;;  %s677_s12 = smov 16  }
  0x13   :  { %37 = dma.hbm_to_vmem [thread:$0]  %s799_s1, 1024, %s32_s25, [#allocation6], %s676_s11, %s676_s11, %s677_s12  }
  0x14   :  { %s678_s15 = smov [#allocation2]   ;;  %s679_s17 = smov [#allocation7]  }
  0x15   :  { %s22_s16 = sshll.u32 %s678_s15, 4  ;;  %s45_s18 = sshll.u32 %s679_s17, 4  ;;  %s23_s16 = int_to_ptr.vmem [resolvable:$true] %s22_s16  ;;  %s46_s18 = int_to_ptr.vmem [resolvable:$true] %s45_s18 }
  0x16   :  { %s579_s21 = scalar_lea.hbm %s798_s0, 16 }
  0x17   :  { %p580_p8 = scmp.ne.s32.totalorder %s798_s0, %s579_s21  ;;  %p583_p9 = scmp.lt.u32.totalorder %s579_s21, %s798_s0 }
  0x19   :  { %p585_p10 = pnand %p583_p9, %p580_p8 }
  0x1b   :  { %588 = shalt.err (!%p585_p10)
}
  0x1c   :  { %s589_s1 = scalar_lea.vmem %s23_s16, 16  ;;  %s593_s25 = scalar_lea.vmem %s23_s16, 32 }
  0x1d   :  { %p590_p11 = scmp.ne.s32.totalorder %s23_s16, %s589_s1  ;;  %p594_p12 = scmp.lt.s32.totalorder %s23_s16, %s23_s16 }
  0x1e   :  { %p595_p13 = scmp.lt.s32.totalorder %s593_s25, %s589_s1 }
  0x20   :  { %p596_p0 = por %p595_p13, %p594_p12 }
  0x22   :  { %p597_p1 = pnand %p596_p0, %p590_p11 }
  0x24   :  { %600 = shalt.err (!%p597_p1)
}
  0x25   :  { %25 = dma.hbm_to_vmem [thread:$0]  %s798_s0, 16, %s23_s16, [#allocation3]  }
  0x26   :  { %s601_s8 = scalar_lea.hbm %s801_s3, 4096 }
  0x27   :  { %p602_p2 = scmp.ne.s32.totalorder %s801_s3, %s601_s8  ;;  %p605_p3 = scmp.lt.u32.totalorder %s601_s8, %s801_s3 }
  0x29   :  { %p607_p4 = pnand %p605_p3, %p602_p2 }
  0x2b   :  { %610 = shalt.err (!%p607_p4)
}
  0x2c   :  { %s611_s13 = scalar_lea.vmem %s46_s18, 4096  ;;  %p616_p6 = scmp.lt.s32.totalorder %s46_s18, %s46_s18 }
  0x2d   :  { %p612_p5 = scmp.ne.s32.totalorder %s46_s18, %s611_s13  ;;  %p617_p7 = scmp.lt.s32.totalorder %s611_s13, %s611_s13 }
  0x2f   :  { %p618_p8 = por %p617_p7, %p616_p6 }
  0x31   :  { %p619_p9 = pnand %p618_p8, %p612_p5 }
  0x33   :  { %622 = shalt.err (!%p619_p9)
}
  0x34   :  { %s680_s0 = smov 128   ;;  %s681_s14 = smov 8  }
  0x35   :  { %51 = dma.hbm_to_vmem [thread:$0]  %s801_s3, 4096, %s46_s18, [#allocation6], %s680_s0, %s680_s0, %s681_s14  }
  0x36   :  { %s682_s17 = smov [#allocation8]   ;;  %s623_s22 = scalar_lea.hbm %s803_s5, 2048 }
  0x37   :  { %s59_s19 = sshll.u32 %s682_s17, 4  ;;  %p624_p10 = scmp.ne.s32.totalorder %s803_s5, %s623_s22  ;;  %s60_s19 = int_to_ptr.vmem [resolvable:$true] %s59_s19 }
  0x38   :  { %p627_p11 = scmp.lt.u32.totalorder %s623_s22, %s803_s5 }
  0x3a   :  { %p629_p12 = pnand %p627_p11, %p624_p10 }
  0x3c   :  { %632 = shalt.err (!%p629_p12)
}
  0x3d   :  { %s633_s25 = scalar_lea.vmem %s60_s19, 2048  ;;  %p638_p0 = scmp.lt.s32.totalorder %s60_s19, %s60_s19 }
  0x3e   :  { %p634_p13 = scmp.ne.s32.totalorder %s60_s19, %s633_s25  ;;  %p639_p1 = scmp.lt.s32.totalorder %s633_s25, %s633_s25 }
  0x40   :  { %p640_p2 = por %p639_p1, %p638_p0 }
  0x42   :  { %p641_p3 = pnand %p640_p2, %p634_p13 }
  0x44   :  { %644 = shalt.err (!%p641_p3)
}
  0x45   :  { %65 = dma.hbm_to_vmem [thread:$0]  %s803_s5, 2048, %s60_s19, [#allocation9], %s680_s0, %s680_s0, %s681_s14  }
  0x46   :  { %667 = dma.done.wait [#allocation3], 16  }
  0x47   :  { %668 = vsyncadd [#allocation3], 4294967280 }
  0x48   :  { %669 = dma.done.wait [#allocation6], 5120  }
  0x49   :  { %670 = vsyncadd [#allocation6], 4294962176 }
  0x4a   :  { %671 = dma.done.wait [#allocation9], 2048  }
  0x4b   :  { %672 = vsyncadd [#allocation9], 4294965248  ;;  %v683_v0 = vmov 0.0   ;;  %v82_v1 = vld [vmem:[#allocation5 + $0x8] sm:$0xff]  ;;  %v84_v2 = vld [vmem:[#allocation5 + $0x18] sm:$0xff]  ;;  %vm101_vm0 = vcmask 261120  }
  0x4c   :  { %169 = vmatprep.mubr.f32.mxu0 %v683_v0  ;;  %v81_v3 = vld [vmem:[#allocation5] sm:$0xff]  ;;  %v479_v4 = vpack.c.bf16 %v84_v2, %v82_v1  ;;  %v83_v5 = vld [vmem:[#allocation5 + $0x10] sm:$0xff]  ;;  %v86_v6 = vld [vmem:[#allocation5 + $0x28] sm:$0xff]  ;;  %v684_v2 = vmov 0.0|0.0   ;;  %vm685_vm1 = vmmov 0   ;;  %s686_s8 = smov [#allocation10]  }
  0x4d   :  { %v88_v7 = vld [vmem:[#allocation5 + $0x38] sm:$0xff]  ;;  %v481_v8 = vpack.c.bf16 %v83_v5, %v81_v3  ;;  %v85_v10 = vld [vmem:[#allocation5 + $0x20] sm:$0xff]  ;;  %v87_v11 = vld [vmem:[#allocation5 + $0x30] sm:$0xff]  ;;  %s380_s9 = sshll.u32 %s686_s8, 4  ;;  %s381_s9 = int_to_ptr.vmem [resolvable:$true] %s380_s9 }
  0x4e   :  { %v483_v9 = vpack.c.bf16 %v88_v7, %v86_v6  ;;  %480 = vmatprep.subr.bf16.mxu0 %v479_v4  ;;  %v194_v12 = vld [vmem:[#allocation7 + $0x80] sm:$0xff]  ;;  %v195_v13 = vld [vmem:[#allocation7 + $0x88] sm:$0xff]  ;;  %v485_v15 = vpack.c.bf16 %v87_v11, %v85_v10  ;;  %v196_v18 = vld [vmem:[#allocation7 + $0x90] sm:$0xff]  ;;  %s649_s10 = scalar_lea.vmem %s381_s9, 32  ;;  %p650_p5 = scmp.lt.s32.totalorder %s381_s9, %s381_s9 }
  0x4f   :  { %v178_v14 = vld [vmem:[#allocation7] sm:$0xff]  ;;  %482 = vmatpush1.bf16.msra.mxu0 %v481_v8  ;;  %v487_v16 = vpack.c.bf16 %v195_v13, %v194_v12  ;;  %v179_v17 = vld [vmem:[#allocation7 + $0x8] sm:$0xff]  ;;  %v197_v19 = vld [vmem:[#allocation7 + $0x98] sm:$0xff] }
  0x50   :  { %484 = vmatprep.subr.bf16.mxu0 %v483_v9  ;;  %v489_v20 = vpack.c.bf16 %v179_v17, %v178_v14  ;;  %v491_v21 = vpack.c.bf16 %v197_v19, %v196_v18  ;;  %v180_v22 = vld [vmem:[#allocation7 + $0x10] sm:$0xff]  ;;  %v181_v23 = vld [vmem:[#allocation7 + $0x18] sm:$0xff]  ;;  %v198_v24 = vld [vmem:[#allocation7 + $0xa0] sm:$0xff]  ;;  %v91_v18 = vlaneseq }
  0x51   :  { %488 = vmatprep.subr.bf16.mxu1 %v487_v16  ;;  %v199_v25 = vld [vmem:[#allocation7 + $0xa8] sm:$0xff]  ;;  %v493_v26 = vpack.c.bf16 %v181_v23, %v180_v22  ;;  %v80_v27 = vld [vmem:[#allocation2] sm:$0x1]  ;;  %v182_v29 = vld [vmem:[#allocation7 + $0x20] sm:$0xff] }
  0x52   :  { %490 = vmatpush3.bf16.msra.mxu1 %v489_v20  ;;  %v495_v28 = vpack.c.bf16 %v199_v25, %v198_v24  ;;  %v183_v30 = vld [vmem:[#allocation7 + $0x28] sm:$0xff]  ;;  %v200_v31 = vld [vmem:[#allocation7 + $0xb0] sm:$0xff]  ;;  %v201_v32 = vld [vmem:[#allocation7 + $0xb8] sm:$0xff]  ;;  %v92_v19 = vshrl.u32 %v91_v18, 7 }
  0x53   :  { %486 = vmatpush1.bf16.msra.mxu0 %v485_v15  ;;  %492 = vmatprep.subr.bf16.mxu1 %v491_v21  ;;  %v497_v33 = vpack.c.bf16 %v183_v30, %v182_v29  ;;  %v499_v34 = vpack.c.bf16 %v201_v32, %v200_v31  ;;  %v184_v35 = vld [vmem:[#allocation7 + $0x30] sm:$0xff]  ;;  %v185_v36 = vld [vmem:[#allocation7 + $0x38] sm:$0xff]  ;;  %v202_v37 = vld [vmem:[#allocation7 + $0xc0] sm:$0xff] }
  0x54   :  { %v203_v38 = vld [vmem:[#allocation7 + $0xc8] sm:$0xff]  ;;  %v501_v39 = vpack.c.bf16 %v185_v36, %v184_v35  ;;  %v186_v41 = vld [vmem:[#allocation7 + $0x40] sm:$0xff]  ;;  %v204_v43 = vld [vmem:[#allocation7 + $0xd0] sm:$0xff]  ;;  %519 = vmatprep.subr.bf16.mxu0 %v684_v2  ;;  %v93_v20 = vsub.s32 0, %v92_v19  ;;  %v97_v22 = vsub.s32 1, %v92_v19 }
  0x55   :  { %v503_v40 = vpack.c.bf16 %v203_v38, %v202_v37  ;;  %v187_v42 = vld [vmem:[#allocation7 + $0x48] sm:$0xff]  ;;  %v205_v44 = vld [vmem:[#allocation7 + $0xd8] sm:$0xff]  ;;  %v188_v47 = vld [vmem:[#allocation7 + $0x50] sm:$0xff] }
  0x56   :  { %391 = vmatmul.mubr.msk.f32.vlgmr.msra.gmra.mrb[0].mxu0 %vm101_vm0, %v80_v27  ;;  %494 = vmatpush3.bf16.msra.mxu1 %v493_v26  ;;  %v505_v45 = vpack.c.bf16 %v187_v42, %v186_v41  ;;  %v507_v46 = vpack.c.bf16 %v205_v44, %v204_v43  ;;  %v189_v48 = vld [vmem:[#allocation7 + $0x58] sm:$0xff]  ;;  %v206_v49 = vld [vmem:[#allocation7 + $0xe0] sm:$0xff]  ;;  %v207_v50 = vld [vmem:[#allocation7 + $0xe8] sm:$0xff] }
  0x57   :  { %496 = vmatprep.subr.bf16.mxu1 %v495_v28  ;;  %v509_v51 = vpack.c.bf16 %v189_v48, %v188_v47  ;;  %v511_v52 = vpack.c.bf16 %v207_v50, %v206_v49  ;;  %v190_v53 = vld [vmem:[#allocation7 + $0x60] sm:$0xff]  ;;  %v191_v54 = vld [vmem:[#allocation7 + $0x68] sm:$0xff]  ;;  %v208_v56 = vld [vmem:[#allocation7 + $0xf0] sm:$0xff]  ;;  %476 = vmatprep.mubr.msk.f32.mxu0 %vm685_vm1, %v683_v0 }
  0x58   :  { %v513_v55 = vpack.c.bf16 %v191_v54, %v190_v53  ;;  %v209_v57 = vld [vmem:[#allocation7 + $0xf8] sm:$0xff]  ;;  %v192_v59 = vld [vmem:[#allocation7 + $0x70] sm:$0xff]  ;;  %v282_v62 = vld [vmem:[#allocation8] sm:$0xff] }
  0x59   :  { %v515_v58 = vpack.c.bf16 %v209_v57, %v208_v56  ;;  %v193_v60 = vld [vmem:[#allocation7 + $0x78] sm:$0xff]  ;;  %v283_v63 = vld [vmem:[#allocation8 + $0x8] sm:$0xff]  ;;  %v284_v1 = vld [vmem:[#allocation8 + $0x10] sm:$0xff] }
  0x5a   :  { %498 = vmatpush3.bf16.msra.mxu1 %v497_v33  ;;  %v517_v61 = vpack.c.bf16 %v193_v60, %v192_v59  ;;  %v520_v3 = vpack.c.bf16 %v283_v63, %v282_v62  ;;  %v285_v4 = vld [vmem:[#allocation8 + $0x18] sm:$0xff]  ;;  %v286_v6 = vld [vmem:[#allocation8 + $0x20] sm:$0xff]  ;;  %v287_v7 = vld [vmem:[#allocation8 + $0x28] sm:$0xff] }
  0x5b   :  { %500 = vmatprep.subr.bf16.mxu1 %v499_v34  ;;  %v523_v5 = vpack.c.bf16 %v285_v4, %v284_v1  ;;  %v526_v8 = vpack.c.bf16 %v287_v7, %v286_v6  ;;  %v288_v9 = vld [vmem:[#allocation8 + $0x30] sm:$0xff]  ;;  %v289_v10 = vld [vmem:[#allocation8 + $0x38] sm:$0xff]  ;;  %v290_v12 = vld [vmem:[#allocation8 + $0x40] sm:$0xff] }
  0x5c   :  { %521 = vmatpush3.bf16.msra.mxu0 %v520_v3  ;;  %v529_v11 = vpack.c.bf16 %v289_v10, %v288_v9  ;;  %v291_v13 = vld [vmem:[#allocation8 + $0x48] sm:$0xff]  ;;  %v292_v15 = vld [vmem:[#allocation8 + $0x50] sm:$0xff]  ;;  %v293_v16 = vld [vmem:[#allocation8 + $0x58] sm:$0xff] }
  0x5d   :  { %522 = vmatprep.subr.bf16.mxu0 %v684_v2  ;;  %v532_v14 = vpack.c.bf16 %v291_v13, %v290_v12  ;;  %v535_v17 = vpack.c.bf16 %v293_v16, %v292_v15  ;;  %v89_v21 = vld [vmem:[%s800_s2] sm:$0x3]  ;;  %v294_v31 = vld [vmem:[#allocation8 + $0x60] sm:$0xff]  ;;  %v295_v32 = vld [vmem:[#allocation8 + $0x68] sm:$0xff] }
  0x5e   :  { %502 = vmatpush3.bf16.msra.mxu1 %v501_v39  ;;  %v94_v23 = vrot.slane %v89_v21, %v93_v20  ;;  %v98_v24 = vrot.slane %v89_v21, %v97_v22  ;;  %v538_v33 = vpack.c.bf16 %v295_v32, %v294_v31  ;;  %v296_v34 = vld [vmem:[#allocation8 + $0x70] sm:$0xff]  ;;  %v297_v35 = vld [vmem:[#allocation8 + $0x78] sm:$0xff] }
  0x5f   :  { %504 = vmatprep.subr.bf16.mxu1 %v503_v40  ;;  %v541_v36 = vpack.c.bf16 %v297_v35, %v296_v34  ;;  %v210_v38 = vld [vmem:[%s802_s4] sm:$0x1]  ;;  %s645_s4 = scalar_lea.vmem %s381_s9, 16 }
  0x60   :  { %524 = vmatpush3.bf16.msra.mxu0 %v523_v5  ;;  %v298_v43 = vld [vmem:[%s804_s6] sm:$0x1]  ;;  %p646_p4 = scmp.ne.s32.totalorder %s381_s9, %s645_s4  ;;  %p651_p6 = scmp.lt.s32.totalorder %s649_s10, %s645_s4 }
  0x61   :  { %525 = vmatprep.subr.bf16.mxu0 %v684_v2 }
  0x62   :  { %506 = vmatpush3.bf16.msra.mxu1 %v505_v45  ;;  %p652_p7 = por %p651_p6, %p650_p5 }
  0x63   :  { %508 = vmatprep.subr.bf16.mxu1 %v507_v46 }
  0x64   :  { %527 = vmatpush3.bf16.msra.mxu0 %v526_v8  ;;  %p653_p8 = pnand %p652_p7, %p646_p4 }
  0x65   :  { %528 = vmatprep.subr.bf16.mxu0 %v684_v2 }
  0x66   :  { %510 = vmatpush3.bf16.msra.mxu1 %v509_v51 }
  0x67   :  { %512 = vmatprep.subr.bf16.mxu1 %v511_v52 }
  0x68   :  { %530 = vmatpush3.bf16.msra.mxu0 %v529_v11 }
  0x69   :  { %531 = vmatprep.subr.bf16.mxu0 %v684_v2 }
  0x6a   :  { %514 = vmatpush3.bf16.msra.mxu1 %v513_v55 }
  0x6b   :  { %516 = vmatprep.subr.bf16.mxu1 %v515_v58 }
  0x6c   :  { %533 = vmatpush3.bf16.msra.mxu0 %v532_v14 }
  0x6d   :  { %534 = vmatprep.subr.bf16.mxu0 %v684_v2 }
  0x6e   :  { %518 = vmatpush3.bf16.msra.mxu1 %v517_v61 }
  0x70   :  { %536 = vmatpush3.bf16.msra.mxu0 %v535_v17 }
  0x71   :  { %537 = vmatprep.subr.bf16.mxu0 %v684_v2 }
  0x74   :  { %539 = vmatpush3.bf16.msra.mxu0 %v538_v33 }
  0x75   :  { %540 = vmatprep.subr.bf16.mxu0 %v684_v2 }
  0x78   :  { %542 = vmatpush3.bf16.msra.mxu0 %v541_v36 }
 0x129   :  { %v171_v25 = vpop.f32.mrb[0].mxu0 }
 0x12a   :  { %v172_v26 = vadd.f32 %v171_v25, %v94_v23  ;;  %v173_v27 = vpop.f32.mrb[1].mxu0 }
 0x12b   :  { %v174_v28 = vadd.f32 %v173_v27, %v98_v24 }
 0x12c   :  { %v176_v30 = vmax.f32 %v172_v26, 0.0 }
 0x12d   :  { %v177_v29 = vmax.f32 %v174_v28, 0.0 }
 0x12f   :  { %275 = vmatprep.mubr.f32.mxu1 %v177_v29 }
 0x130   :  { %276 = vmatmul.mubr.f32.vlgmr.msra.gmra.mrb[0].mxu1 %v176_v30 }
 0x203   :  { %v424_v37 = vpop.f32.mrb[0].mxu1 }
 0x204   :  { %v425_v39 = vpop.f32.mrb[1].mxu1 }
 0x205   :  { %v426_v40 = vadd.f32 %v425_v39, %v424_v37 }
 0x207   :  { %v278_v41 = vadd.f32 %v426_v40, %v210_v38 }
 0x209   :  { %v281_v42 = vmax.f32 %v278_v41, 0.0 }
 0x20b   :  { %477 = vmatmul.mubr.f32.vlgmr.msra.gmra.mrb[2].mxu0 %v281_v42 }
 0x2de   :  { %v365_v44 = vpop.f32.mrb[2].mxu0 }
 0x2df   :  { %v366_v45 = vadd.f32 %v365_v44, %v298_v43  ;;  %v478_v46 = vpop.f32.mrb[3].mxu0 }
 0x2e1   :  { %v369_v47 = vmul.f32 0.5, %v366_v45 }
 0x2e3   :  { %555 = vtanh.f32 %v369_v47 }
 0x2ed   :  { %v556_v0 = vpop.eup %555 }
 0x2ee   :  { %v371_v48 = vmul.f32 0.5, %v556_v0 }
 0x2f0   :  { %v372_v49 = vadd.f32 0.5, %v371_v48 }
 0x2f2   :  { %373 = vst [vmem:[#allocation10] sm:$0x1] %v372_v49 }
 0x2f3   :  { %656 = shalt.err (!%p653_p8)
}
 0x2f4   :  { %s657_s12 = scalar_lea.hbm %s805_s7, 16 }
 0x2f5   :  { %p658_p9 = scmp.ne.s32.totalorder %s805_s7, %s657_s12  ;;  %p661_p10 = scmp.lt.u32.totalorder %s657_s12, %s805_s7 }
 0x2f7   :  { %p663_p11 = pnand %p661_p10, %p658_p9 }
 0x2f9   :  { %666 = shalt.err (!%p663_p11)
}
 0x2fa   :  { %383 = dma.vmem_to_hbm [thread:$0]  %s381_s9, 16, %s805_s7, [#allocation4]  }
 0x2fb   :  { %673 = dma.done.wait [#allocation4], 16  }
 0x2fc   :  { %674 = vsyncadd [#allocation4], 4294967280 }
 0x2fd   :  { %387 = vsyncpa [#allocation3], 1 }
 0x2fe   :  { %388 = vsyncpa [#allocation6], 1 }
 0x2ff   :  { %389 = vsyncpa [#allocation9], 1 }
 0x300   :  { %390 = vsyncpa [#allocation4], 1 }

</bundles_post_ra>
